<compile_context>
chip_gen: v5e
topology: v5e:2x2
jax: 0.10.0
libtpu: 0.0.40
codegen_flags: <defaults>
</compile_context>

<pallas_src>
import jax
import jax.numpy as jnp
from jax.experimental import pallas as pl
from jax.experimental.pallas import tpu as pltpu

LANE = 128


def mlp_kernel(x_ref,
               w1_ref, b1_ref,
               w2_ref, b2_ref,
               w3_ref, b3_ref,
               w4_ref, b4_ref,
               o_ref):
    """Fused 4-layer MLP forward for one batch tile.

    Matmuls run on the MXU with bf16 operands / f32 accumulation; bias adds and
    sigmoids stay in f32. All feature dims are pre-padded to 128 lanes in the
    wrapper, so every access is lane-dense.
    """
    h = x_ref[...].astype(jnp.bfloat16)

    h = jnp.dot(h, w1_ref[...], preferred_element_type=jnp.float32) + b1_ref[...]
    h = jax.nn.sigmoid(h).astype(jnp.bfloat16)

    h = jnp.dot(h, w2_ref[...], preferred_element_type=jnp.float32) + b2_ref[...]
    h = jax.nn.sigmoid(h).astype(jnp.bfloat16)

    h = jnp.dot(h, w3_ref[...], preferred_element_type=jnp.float32) + b3_ref[...]
    h = jax.nn.sigmoid(h).astype(jnp.bfloat16)

    out = jnp.dot(h, w4_ref[...], preferred_element_type=jnp.float32) + b4_ref[...]
    o_ref[...] = out.astype(o_ref.dtype)


def _round_up(n, m):
    return ((n + m - 1) // m) * m


def _pad2d(a, rows, cols):
    r, c = a.shape
    return jnp.pad(a, ((0, rows - r), (0, cols - c)))


def init_params(key, input_size, n_hidden1, n_hidden2, n_hidden3, output_size):
    """Deterministic init mimicking torch.nn.Linear default (uniform +-1/sqrt(fan_in)),
    weights stored pre-transposed as (in_features, out_features), f32."""
    dims = [(input_size, n_hidden1),
            (n_hidden1, n_hidden2),
            (n_hidden2, n_hidden3),
            (n_hidden3, output_size)]
    params = {}
    for i, (fan_in, fan_out) in enumerate(dims, start=1):
        key, kw, kb = jax.random.split(key, 3)
        bound = 1.0 / (fan_in ** 0.5)
        params[f"w{i}"] = jax.random.uniform(
            kw, (fan_in, fan_out), minval=-bound, maxval=bound, dtype=jnp.float32)
        params[f"b{i}"] = jax.random.uniform(
            kb, (1, fan_out), minval=-bound, maxval=bound, dtype=jnp.float32)
    return params


def prepare_kernel_params(params):
    """Zero-pad every weight/bias up to 128-lane multiples ONCE, cast weights to
    bf16 for the MXU (biases stay f32). Zero padding is semantics-preserving:
    padded weight rows are zero, so the sigmoid(0)=0.5 values in padded hidden
    columns contribute exactly nothing downstream."""
    kp = {}
    for i in range(1, 5):
        w = params[f"w{i}"]
        b = params[f"b{i}"]
        in_p = _round_up(w.shape[0], LANE)
        out_p = _round_up(w.shape[1], LANE)
        kp[f"w{i}"] = _pad2d(w, in_p, out_p).astype(jnp.bfloat16)
        kp[f"b{i}"] = _pad2d(b, 1, out_p).astype(jnp.float32)
    return kp


def mlp_forward(x, kernel_params, out_size, *, batch_tile=128):
    batch, in_f = x.shape
    in_pad = kernel_params["w1"].shape[0]
    out_pad = kernel_params["w4"].shape[1]

    # Batch tile: multiple of 8 sublanes; for large batches use 128-row tiles
    # (well under v7x's 64 MiB VMEM even double-buffered).
    tb = min(batch_tile, _round_up(batch, 8))
    batch_pad = _round_up(batch, tb)

    x_p = jnp.pad(x.astype(jnp.float32),
                  ((0, batch_pad - batch), (0, in_pad - in_f)))

    args = (x_p,
            kernel_params["w1"], kernel_params["b1"],
            kernel_params["w2"], kernel_params["b2"],
            kernel_params["w3"], kernel_params["b3"],
            kernel_params["w4"], kernel_params["b4"])

    # x / out tiled along batch; weights & biases map to block (0, 0) every grid
    # step so they remain resident in VMEM (DMA'd once).
    def resident(shape):
        return pl.BlockSpec(shape, lambda i: (0, 0))

    in_specs = [pl.BlockSpec((tb, in_pad), lambda i: (i, 0))]
    for i in range(1, 5):
        in_specs.append(resident(kernel_params[f"w{i}"].shape))
        in_specs.append(resident(kernel_params[f"b{i}"].shape))
    out_specs = pl.BlockSpec((tb, out_pad), lambda i: (i, 0))

    flops = 0
    for i in range(1, 5):
        w = kernel_params[f"w{i}"]
        flops += 2 * batch_pad * w.shape[0] * w.shape[1]
    transcendentals = batch_pad * (kernel_params["w1"].shape[1]
                                   + kernel_params["w2"].shape[1]
                                   + kernel_params["w3"].shape[1])
    bytes_accessed = int(sum(a.size * a.dtype.itemsize for a in args)
                         + batch_pad * out_pad * 4)

    out = pl.pallas_call(
        mlp_kernel,
        out_shape=jax.ShapeDtypeStruct((batch_pad, out_pad), jnp.float32),
        grid=(batch_pad // tb,),
        in_specs=in_specs,
        out_specs=out_specs,
        compiler_params=pltpu.CompilerParams(
            dimension_semantics=("parallel",)),
        cost_estimate=pl.CostEstimate(
            flops=flops,
            transcendentals=transcendentals,
            bytes_accessed=bytes_accessed),
    )(*args)

    return out[:batch, :out_size]


def reference_forward(x, params):
    """Pure-JAX reference with the same numerics as the kernel
    (bf16 matmul operands, f32 accumulation, f32 elementwise)."""
    def layer(h, w, b):
        return jnp.dot(h.astype(jnp.bfloat16), w.astype(jnp.bfloat16),
                       preferred_element_type=jnp.float32) + b
    h = jax.nn.sigmoid(layer(x, params["w1"], params["b1"]))
    h = jax.nn.sigmoid(layer(h, params["w2"], params["b2"]))
    h = jax.nn.sigmoid(layer(h, params["w3"], params["b3"]))
    return layer(h, params["w4"], params["b4"])


if __name__ == "__main__":
    # Small shapes consistent with the MLP: batch=8, input=32, hidden=(64, 64, 32), output=8.
    input_size, n_hidden1, n_hidden2, n_hidden3, output_size = 32, 64, 64, 32, 8
    batch = 8

    key = jax.random.PRNGKey(0)
    key, kx = jax.random.split(key)
    x = jax.random.normal(kx, (batch, input_size), dtype=jnp.float32)

    params = init_params(key, input_size, n_hidden1, n_hidden2, n_hidden3, output_size)
    kparams = prepare_kernel_params(params)

    out = mlp_forward(x, kparams, output_size)
    out = jax.block_until_ready(out)

    ref = reference_forward(x, params)
    assert out.shape == (batch, output_size), out.shape
    err = float(jnp.max(jnp.abs(out - ref)))
    assert jnp.allclose(out, ref, atol=2e-3, rtol=2e-3), f"max abs err {err}"

    print("KERNEL_OK")
</pallas_src>

<mosaic_0001>
module attributes {stable_mosaic.version = 11 : i64} {
  func.func @mlp_kernel(%arg0: i32, %arg1: memref<8x128xf32, #tpu.memory_space<vmem>>, %arg2: memref<128x128xbf16, #tpu.memory_space<vmem>>, %arg3: memref<1x128xf32, #tpu.memory_space<vmem>>, %arg4: memref<128x128xbf16, #tpu.memory_space<vmem>>, %arg5: memref<1x128xf32, #tpu.memory_space<vmem>>, %arg6: memref<128x128xbf16, #tpu.memory_space<vmem>>, %arg7: memref<1x128xf32, #tpu.memory_space<vmem>>, %arg8: memref<128x128xbf16, #tpu.memory_space<vmem>>, %arg9: memref<1x128xf32, #tpu.memory_space<vmem>>, %arg10: memref<8x128xf32, #tpu.memory_space<vmem>>) attributes {dimension_semantics = [#tpu.dimension_semantics<parallel>], iteration_bounds = array<i64: 1>, scalar_prefetch = 0 : i64, scratch_operands = 0 : i64, tpu.core_type = #tpu.core_type<tc>, window_params = [{transform_indices = @transform_0, window_bounds = array<i64: 8, 128>}, {pipeline_mode = #tpu.pipeline_mode<synchronous>, transform_indices = @transform_1, window_bounds = array<i64: 128, 128>}, {pipeline_mode = #tpu.pipeline_mode<synchronous>, transform_indices = @transform_2, window_bounds = array<i64: 1, 128>}, {pipeline_mode = #tpu.pipeline_mode<synchronous>, transform_indices = @transform_3, window_bounds = array<i64: 128, 128>}, {pipeline_mode = #tpu.pipeline_mode<synchronous>, transform_indices = @transform_4, window_bounds = array<i64: 1, 128>}, {pipeline_mode = #tpu.pipeline_mode<synchronous>, transform_indices = @transform_5, window_bounds = array<i64: 128, 128>}, {pipeline_mode = #tpu.pipeline_mode<synchronous>, transform_indices = @transform_6, window_bounds = array<i64: 1, 128>}, {pipeline_mode = #tpu.pipeline_mode<synchronous>, transform_indices = @transform_7, window_bounds = array<i64: 128, 128>}, {pipeline_mode = #tpu.pipeline_mode<synchronous>, transform_indices = @transform_8, window_bounds = array<i64: 1, 128>}, {transform_indices = @transform_9, window_bounds = array<i64: 8, 128>}]} {
    %c0 = arith.constant 0 : index
    %c0_0 = arith.constant 0 : index
    %0 = vector.load %arg1[%c0, %c0_0] : memref<8x128xf32, #tpu.memory_space<vmem>>, vector<8x128xf32>
    %1 = arith.truncf %0 : vector<8x128xf32> to vector<8x128xbf16>
    %c0_1 = arith.constant 0 : index
    %c0_2 = arith.constant 0 : index
    %2 = vector.load %arg2[%c0_1, %c0_2] : memref<128x128xbf16, #tpu.memory_space<vmem>>, vector<128x128xbf16>
    %cst = arith.constant dense<0.000000e+00> : vector<8x128xf32>
    %3 = tpu.matmul %1, %2, %cst {dimension_numbers = #tpu.dot_dimension_numbers<[1], [0], [0], [1], [0, 0, 1, 1], [], []>} : vector<8x128xbf16>, vector<128x128xbf16>, vector<8x128xf32> -> vector<8x128xf32>
    %c0_3 = arith.constant 0 : index
    %c0_4 = arith.constant 0 : index
    %4 = vector.load %arg3[%c0_3, %c0_4] : memref<1x128xf32, #tpu.memory_space<vmem>>, vector<1x128xf32>
    %5 = vector.broadcast %4 : vector<1x128xf32> to vector<8x128xf32>
    %6 = arith.addf %3, %5 : vector<8x128xf32>
    %7 = arith.negf %6 : vector<8x128xf32>
    %8 = math.exp %7 : vector<8x128xf32>
    %cst_5 = arith.constant 1.000000e+00 : f32
    %9 = vector.broadcast %cst_5 : f32 to vector<8x128xf32>
    %10 = arith.addf %9, %8 : vector<8x128xf32>
    %11 = arith.divf %9, %10 : vector<8x128xf32>
    %12 = arith.truncf %11 : vector<8x128xf32> to vector<8x128xbf16>
    %c0_6 = arith.constant 0 : index
    %c0_7 = arith.constant 0 : index
    %13 = vector.load %arg4[%c0_6, %c0_7] : memref<128x128xbf16, #tpu.memory_space<vmem>>, vector<128x128xbf16>
    %cst_8 = arith.constant dense<0.000000e+00> : vector<8x128xf32>
    %14 = tpu.matmul %12, %13, %cst_8 {dimension_numbers = #tpu.dot_dimension_numbers<[1], [0], [0], [1], [0, 0, 1, 1], [], []>} : vector<8x128xbf16>, vector<128x128xbf16>, vector<8x128xf32> -> vector<8x128xf32>
    %c0_9 = arith.constant 0 : index
    %c0_10 = arith.constant 0 : index
    %15 = vector.load %arg5[%c0_9, %c0_10] : memref<1x128xf32, #tpu.memory_space<vmem>>, vector<1x128xf32>
    %16 = vector.broadcast %15 : vector<1x128xf32> to vector<8x128xf32>
    %17 = arith.addf %14, %16 : vector<8x128xf32>
    %18 = arith.negf %17 : vector<8x128xf32>
    %19 = math.exp %18 : vector<8x128xf32>
    %cst_11 = arith.constant 1.000000e+00 : f32
    %20 = vector.broadcast %cst_11 : f32 to vector<8x128xf32>
    %21 = arith.addf %20, %19 : vector<8x128xf32>
    %22 = arith.divf %20, %21 : vector<8x128xf32>
    %23 = arith.truncf %22 : vector<8x128xf32> to vector<8x128xbf16>
    %c0_12 = arith.constant 0 : index
    %c0_13 = arith.constant 0 : index
    %24 = vector.load %arg6[%c0_12, %c0_13] : memref<128x128xbf16, #tpu.memory_space<vmem>>, vector<128x128xbf16>
    %cst_14 = arith.constant dense<0.000000e+00> : vector<8x128xf32>
    %25 = tpu.matmul %23, %24, %cst_14 {dimension_numbers = #tpu.dot_dimension_numbers<[1], [0], [0], [1], [0, 0, 1, 1], [], []>} : vector<8x128xbf16>, vector<128x128xbf16>, vector<8x128xf32> -> vector<8x128xf32>
    %c0_15 = arith.constant 0 : index
    %c0_16 = arith.constant 0 : index
    %26 = vector.load %arg7[%c0_15, %c0_16] : memref<1x128xf32, #tpu.memory_space<vmem>>, vector<1x128xf32>
    %27 = vector.broadcast %26 : vector<1x128xf32> to vector<8x128xf32>
    %28 = arith.addf %25, %27 : vector<8x128xf32>
    %29 = arith.negf %28 : vector<8x128xf32>
    %30 = math.exp %29 : vector<8x128xf32>
    %cst_17 = arith.constant 1.000000e+00 : f32
    %31 = vector.broadcast %cst_17 : f32 to vector<8x128xf32>
    %32 = arith.addf %31, %30 : vector<8x128xf32>
    %33 = arith.divf %31, %32 : vector<8x128xf32>
    %34 = arith.truncf %33 : vector<8x128xf32> to vector<8x128xbf16>
    %c0_18 = arith.constant 0 : index
    %c0_19 = arith.constant 0 : index
    %35 = vector.load %arg8[%c0_18, %c0_19] : memref<128x128xbf16, #tpu.memory_space<vmem>>, vector<128x128xbf16>
    %cst_20 = arith.constant dense<0.000000e+00> : vector<8x128xf32>
    %36 = tpu.matmul %34, %35, %cst_20 {dimension_numbers = #tpu.dot_dimension_numbers<[1], [0], [0], [1], [0, 0, 1, 1], [], []>} : vector<8x128xbf16>, vector<128x128xbf16>, vector<8x128xf32> -> vector<8x128xf32>
    %c0_21 = arith.constant 0 : index
    %c0_22 = arith.constant 0 : index
    %37 = vector.load %arg9[%c0_21, %c0_22] : memref<1x128xf32, #tpu.memory_space<vmem>>, vector<1x128xf32>
    %38 = vector.broadcast %37 : vector<1x128xf32> to vector<8x128xf32>
    %39 = arith.addf %36, %38 : vector<8x128xf32>
    %c0_23 = arith.constant 0 : index
    %c0_24 = arith.constant 0 : index
    %40 = vector.load %arg10[%c0_23, %c0_24] : memref<8x128xf32, #tpu.memory_space<vmem>>, vector<8x128xf32>
    tpu.vector_store %arg10[%c0_23, %c0_24], %39 {strides = array<i32>} : memref<8x128xf32, #tpu.memory_space<vmem>>, vector<8x128xf32>,
    return
  }
  func.func @transform_0(%arg0: i32) -> (i32, i32) {
    %c0_i32 = arith.constant 0 : i32
    %c0_i32_0 = arith.constant 0 : i32
    return %arg0, %c0_i32 : i32, i32
  }
  func.func @transform_1(%arg0: i32) -> (i32, i32) {
    %c0_i32 = arith.constant 0 : i32
    %c0_i32_0 = arith.constant 0 : i32
    %c0_i32_1 = arith.constant 0 : i32
    return %c0_i32, %c0_i32_0 : i32, i32
  }
  func.func @transform_2(%arg0: i32) -> (i32, i32) {
    %c0_i32 = arith.constant 0 : i32
    %c0_i32_0 = arith.constant 0 : i32
    %c0_i32_1 = arith.constant 0 : i32
    return %c0_i32, %c0_i32_0 : i32, i32
  }
  func.func @transform_3(%arg0: i32) -> (i32, i32) {
    %c0_i32 = arith.constant 0 : i32
    %c0_i32_0 = arith.constant 0 : i32
    %c0_i32_1 = arith.constant 0 : i32
    return %c0_i32, %c0_i32_0 : i32, i32
  }
  func.func @transform_4(%arg0: i32) -> (i32, i32) {
    %c0_i32 = arith.constant 0 : i32
    %c0_i32_0 = arith.constant 0 : i32
    %c0_i32_1 = arith.constant 0 : i32
    return %c0_i32, %c0_i32_0 : i32, i32
  }
  func.func @transform_5(%arg0: i32) -> (i32, i32) {
    %c0_i32 = arith.constant 0 : i32
    %c0_i32_0 = arith.constant 0 : i32
    %c0_i32_1 = arith.constant 0 : i32
    return %c0_i32, %c0_i32_0 : i32, i32
  }
  func.func @transform_6(%arg0: i32) -> (i32, i32) {
    %c0_i32 = arith.constant 0 : i32
    %c0_i32_0 = arith.constant 0 : i32
    %c0_i32_1 = arith.constant 0 : i32
    return %c0_i32, %c0_i32_0 : i32, i32
  }
  func.func @transform_7(%arg0: i32) -> (i32, i32) {
    %c0_i32 = arith.constant 0 : i32
    %c0_i32_0 = arith.constant 0 : i32
    %c0_i32_1 = arith.constant 0 : i32
    return %c0_i32, %c0_i32_0 : i32, i32
  }
  func.func @transform_8(%arg0: i32) -> (i32, i32) {
    %c0_i32 = arith.constant 0 : i32
    %c0_i32_0 = arith.constant 0 : i32
    %c0_i32_1 = arith.constant 0 : i32
    return %c0_i32, %c0_i32_0 : i32, i32
  }
  func.func @transform_9(%arg0: i32) -> (i32, i32) {
    %c0_i32 = arith.constant 0 : i32
    %c0_i32_0 = arith.constant 0 : i32
    return %arg0, %c0_i32 : i32, i32
  }
}

</mosaic_0001>

<bundles_post_ra>
// kernel: tpu_custom_call.1
= control target key start
LH: loop header
LB: loop body
LE: loop exit
PB: predicated region body
PF: predicated region fallthrough
CT: control target
= control target key end

     0   :  { %14 = vsyncpa [#allocation3], 0  ;;  %s942_s0 = inlined_call_operand.hbm [shape: f32[8,128], index: 0, kind: input, shape index: {}]   ;;  %s943_s1 = inlined_call_operand.hbm [shape: bf16[128,128], index: 1, kind: input, shape index: {}]   ;;  %s944_s2 = inlined_call_operand.vmem [shape: f32[1,128], index: 2, kind: input, shape index: {}]   ;;  %s945_s3 = inlined_call_operand.hbm [shape: bf16[128,128], index: 3, kind: input, shape index: {}]   ;;  %s946_s4 = inlined_call_operand.vmem [shape: f32[1,128], index: 4, kind: input, shape index: {}]   ;;  %s947_s5 = inlined_call_operand.hbm [shape: bf16[128,128], index: 5, kind: input, shape index: {}]   ;;  %s948_s6 = inlined_call_operand.vmem [shape: f32[1,128], index: 6, kind: input, shape index: {}]   ;;  %s949_s7 = inlined_call_operand.hbm [shape: bf16[128,128], index: 7, kind: input, shape index: {}]   ;;  %s950_s8 = inlined_call_operand.vmem [shape: f32[1,128], index: 8, kind: input, shape index: {}]   ;;  %s951_s9 = inlined_call_operand.hbm [shape: f32[8,128], index: 9, kind: output, shape index: {}]  }
   0x1   :  { %15 = vsyncpa [#allocation6], 0 }
   0x2   :  { %16 = vsyncpa [#allocation9], 0  ;;  %s33_s11 = sshll.u32 %s943_s1, 4  ;;  %s34_s11 = int_to_ptr.hbm [resolvable:$true] %s33_s11 }
   0x3   :  { %17 = vsyncpa [#allocation4], 0  ;;  %s854_s12 = smov [#allocation5]   ;;  %s63_s16 = sshll.u32 %s947_s5, 4  ;;  %s64_s16 = int_to_ptr.hbm [resolvable:$true] %s63_s16 }
   0x4   :  { %s35_s13 = sshll.u32 %s854_s12, 4  ;;  %s855_s17 = smov 64   ;;  %s36_s13 = int_to_ptr.vmem [resolvable:$true] %s35_s13 }
   0x5   :  { %s856_s18 = smov 4   ;;  %s857_s19 = smov [#allocation8]  }
   0x6   :  { %41 = dma.hbm_to_vmem [thread:$0]  %s34_s11, 1024, %s36_s13, [#allocation6], %s855_s17, %s855_s17, %s856_s18  }
   0x7   :  { %s65_s20 = sshll.u32 %s857_s19, 4  ;;  %s23_s23 = sshll.u32 %s942_s0, 4  ;;  %s66_s20 = int_to_ptr.vmem [resolvable:$true] %s65_s20  ;;  %s24_s23 = int_to_ptr.hbm [resolvable:$true] %s23_s23 }
   0x8   :  { %71 = dma.hbm_to_vmem [thread:$0]  %s64_s16, 1024, %s66_s20, [#allocation9], %s855_s17, %s855_s17, %s856_s18  }
   0x9   :  { %s48_s25 = sshll.u32 %s945_s3, 4  ;;  %s858_s26 = smov [#allocation2]   ;;  %s49_s25 = int_to_ptr.hbm [resolvable:$true] %s48_s25 }
   0xa   :  { %s25_s27 = sshll.u32 %s858_s26, 4  ;;  %s859_s5 = smov [#allocation7]   ;;  %s26_s27 = int_to_ptr.vmem [resolvable:$true] %s25_s27 }
   0xb   :  { %28 = dma.hbm_to_vmem [thread:$0]  %s24_s23, 128, %s26_s27, [#allocation3]  }
   0xc   :  { %s50_s28 = sshll.u32 %s859_s5, 4  ;;  %s78_s10 = sshll.u32 %s949_s7, 4  ;;  %s51_s28 = int_to_ptr.vmem [resolvable:$true] %s50_s28  ;;  %s79_s10 = int_to_ptr.hbm [resolvable:$true] %s78_s10 }
   0xd   :  { %56 = dma.hbm_to_vmem [thread:$0]  %s49_s25, 1024, %s51_s28, [#allocation6], %s855_s17, %s855_s17, %s856_s18  }
   0xe   :  { %s860_s0 = smov [#allocation10]  }
   0xf   :  { %s80_s11 = sshll.u32 %s860_s0, 4  ;;  %s81_s11 = int_to_ptr.vmem [resolvable:$true] %s80_s11 }
  0x10   :  { %86 = dma.hbm_to_vmem [thread:$0]  %s79_s10, 1024, %s81_s11, [#allocation9], %s855_s17, %s855_s17, %s856_s18  }
  0x11   :  { %846 = dma.done.wait [#allocation3], 128  }
  0x12   :  { %847 = vsyncadd [#allocation3], 4294967168 }
  0x13   :  { %848 = dma.done.wait [#allocation6], 2048  }
  0x14   :  { %849 = vsyncadd [#allocation6], 4294965248 }
  0x15   :  { %850 = dma.done.wait [#allocation9], 2048  }
  0x16   :  { %851 = vsyncadd [#allocation9], 4294965248  ;;  %v653_v0 = vld [vmem:[#allocation5 + $0x38] sm:$0xff]  ;;  %v652_v1 = vld [vmem:[#allocation5 + $0x30] sm:$0xff]  ;;  %s861_s15 = smov [#allocation11]   ;;  %s503_s19 = sshll.u32 %s951_s9, 4  ;;  %s504_s19 = int_to_ptr.hbm [resolvable:$true] %s503_s19 }
  0x17   :  { %179 = vmatpush.bf16.msra.mxu0 %v653_v0  ;;  %v651_v2 = vld [vmem:[#allocation5 + $0x28] sm:$0xff]  ;;  %v650_v3 = vld [vmem:[#allocation5 + $0x20] sm:$0xff]  ;;  %v649_v4 = vld [vmem:[#allocation5 + $0x18] sm:$0xff]  ;;  %s501_s16 = sshll.u32 %s861_s15, 4  ;;  %s502_s16 = int_to_ptr.vmem [resolvable:$true] %s501_s16 }
  0x18   :  { %v648_v5 = vld [vmem:[#allocation5 + $0x10] sm:$0xff]  ;;  %v647_v6 = vld [vmem:[#allocation5 + $0x8] sm:$0xff]  ;;  %v646_v7 = vld [vmem:[#allocation5] sm:$0xff] }
  0x19   :  { %v109_v8 = vld [vmem:[#allocation2] sm:$0xff]  ;;  %v660_v11 = vld [vmem:[#allocation7 + $0x30] sm:$0xff]  ;;  %v659_v12 = vld [vmem:[#allocation7 + $0x28] sm:$0xff] }
  0x1a   :  { %v110_v9 = vpack.c.bf16 %v109_v8, %v109_v8  ;;  %v661_v10 = vld [vmem:[#allocation7 + $0x38] sm:$0xff]  ;;  %v658_v13 = vld [vmem:[#allocation7 + $0x20] sm:$0xff]  ;;  %v656_v15 = vld [vmem:[#allocation7 + $0x10] sm:$0xff] }
  0x1b   :  { %180 = vmatpush.bf16.msra.mxu0 %v652_v1  ;;  %280 = vmatpush.bf16.msra.mxu1 %v661_v10  ;;  %v657_v14 = vld [vmem:[#allocation7 + $0x18] sm:$0xff]  ;;  %v655_v16 = vld [vmem:[#allocation7 + $0x8] sm:$0xff]  ;;  %v654_v17 = vld [vmem:[#allocation7] sm:$0xff] }
  0x1c   :  { %v686_v18 = vld [vmem:[%s944_s2] ss:$0 sm:$0xff]  ;;  %v668_v37 = vld [vmem:[#allocation8 + $0x30] sm:$0xff]  ;;  %v667_v38 = vld [vmem:[#allocation8 + $0x28] sm:$0xff] }
  0x1d   :  { %v669_v36 = vld [vmem:[#allocation8 + $0x38] sm:$0xff]  ;;  %v666_v39 = vld [vmem:[#allocation8 + $0x20] sm:$0xff]  ;;  %v664_v41 = vld [vmem:[#allocation8 + $0x10] sm:$0xff] }
  0x1e   :  { %381 = vmatpush.bf16.msra.mxu2 %v669_v36  ;;  %v665_v40 = vld [vmem:[#allocation8 + $0x18] sm:$0xff]  ;;  %v663_v42 = vld [vmem:[#allocation8 + $0x8] sm:$0xff]  ;;  %v662_v43 = vld [vmem:[#allocation8] sm:$0xff] }
  0x1f   :  { %181 = vmatpush.bf16.msra.mxu0 %v651_v2  ;;  %281 = vmatpush.bf16.msra.mxu1 %v660_v11  ;;  %v687_v44 = vld [vmem:[%s946_s4] ss:$0 sm:$0xff]  ;;  %v676_v63 = vld [vmem:[#allocation10 + $0x30] sm:$0xff]  ;;  %v675_v0 = vld [vmem:[#allocation10 + $0x28] sm:$0xff] }
  0x20   :  { %v677_v62 = vld [vmem:[#allocation10 + $0x38] sm:$0xff]  ;;  %v674_v1 = vld [vmem:[#allocation10 + $0x20] sm:$0xff] }
  0x21   :  { %482 = vmatpush.bf16.msra.mxu3 %v677_v62  ;;  %v673_v2 = vld [vmem:[#allocation10 + $0x18] sm:$0xff] }
  0x22   :  { %382 = vmatpush.bf16.msra.mxu2 %v668_v37 }
  0x23   :  { %182 = vmatpush.bf16.msra.mxu0 %v650_v3  ;;  %282 = vmatpush.bf16.msra.mxu1 %v659_v12  ;;  %v672_v3 = vld [vmem:[#allocation10 + $0x10] sm:$0xff] }
  0x25   :  { %483 = vmatpush.bf16.msra.mxu3 %v676_v63 }
  0x26   :  { %383 = vmatpush.bf16.msra.mxu2 %v667_v38 }
  0x27   :  { %183 = vmatpush.bf16.msra.mxu0 %v649_v4  ;;  %283 = vmatpush.bf16.msra.mxu1 %v658_v13  ;;  %v671_v4 = vld [vmem:[#allocation10 + $0x8] sm:$0xff] }
  0x29   :  { %484 = vmatpush.bf16.msra.mxu3 %v675_v0 }
  0x2a   :  { %384 = vmatpush.bf16.msra.mxu2 %v666_v39 }
  0x2b   :  { %184 = vmatpush.bf16.msra.mxu0 %v648_v5  ;;  %284 = vmatpush.bf16.msra.mxu1 %v657_v14  ;;  %v670_v5 = vld [vmem:[#allocation10] sm:$0xff] }
  0x2d   :  { %485 = vmatpush.bf16.msra.mxu3 %v674_v1 }
  0x2e   :  { %385 = vmatpush.bf16.msra.mxu2 %v665_v40 }
  0x2f   :  { %185 = vmatpush.bf16.msra.mxu0 %v647_v6  ;;  %285 = vmatpush.bf16.msra.mxu1 %v656_v15  ;;  %v688_v6 = vld [vmem:[%s948_s6] ss:$0 sm:$0xff] }
  0x31   :  { %486 = vmatpush.bf16.msra.mxu3 %v673_v2 }
  0x32   :  { %386 = vmatpush.bf16.msra.mxu2 %v664_v41 }
  0x33   :  { %186 = vmatpush.bf16.msra.mxu0 %v646_v7  ;;  %286 = vmatpush.bf16.msra.mxu1 %v655_v16 }
  0x35   :  { %487 = vmatpush.bf16.msra.mxu3 %v672_v3 }
  0x36   :  { %187 = vmatmul.bf16.vlgmr.msra.gmra.mxu0 %v110_v9  ;;  %387 = vmatpush.bf16.msra.mxu2 %v663_v42 }
  0x37   :  { %287 = vmatpush.bf16.msra.mxu1 %v654_v17 }
  0x39   :  { %488 = vmatpush.bf16.msra.mxu3 %v671_v4 }
  0x3a   :  { %388 = vmatpush.bf16.msra.mxu2 %v662_v43 }
  0x3d   :  { %489 = vmatpush.bf16.msra.mxu3 %v670_v5 }
  0xb3   :  { %v188_v19 = vpop.f32.mrf.mxu0 }
  0xb4   :  { %v189_v20 = vadd.f32 %v686_v18, %v188_v19 }
  0xb6   :  { %v547_v21 = vmul.f32 -1.442695, %v189_v20 }
  0xb8   :  { %690 = vpow2.f32 %v547_v21 }
  0xbb   :  { %v190_v22 = vpop.f32.mrf.mxu0 }
  0xbe   :  { %v691_v23 = vpop.eup %690 }
  0xbf   :  { %v195_v24 = vadd.f32 1.0, %v691_v23 }
  0xc1   :  { %692 = vrcp.f32 %v195_v24  ;;  %v207_v28 = vand.u32 2147483648, %v195_v24  ;;  %v205_v30 = vand.u32 2147483647, %v195_v24  ;;  %vm201_vm1 = vweird.f32 %v195_v24 }
  0xc3   :  { %v208_v32 = vor.u32 1.1754944e-38, %v207_v28  ;;  %vm206_vm3 = vcmp.eq.f32.partialorder %v205_v30, 8.507059e+37 }
  0xc7   :  { %v693_v25 = vpop.eup %692 }
  0xc8   :  { %v197_v26 = vmul.f32 %v693_v25, %v195_v24  ;;  %vm202_vm0 = vweird.f32 %v693_v25  ;;  %v689_v24 = vld [vmem:[%s950_s8] ss:$0 sm:$0xff] }
  0xc9   :  { %vm203_vm2 = vmor %vm201_vm1, %vm202_vm0 }
  0xca   :  { %v198_v27 = vsub.f32 1.0, %v197_v26 }
  0xcc   :  { %v199_v29 = vmul.f32 %v693_v25, %v198_v27 }
  0xce   :  { %v200_v31 = vadd.f32 %v693_v25, %v199_v29 }
  0xd0   :  { %v204_v33 = vsel %vm203_vm2, %v693_v25, %v200_v31 }
  0xd1   :  { %v209_v34 = vsel %vm206_vm3, %v208_v32, %v204_v33 }
  0xd2   :  { %v211_v35 = vpack.c.bf16 %v209_v34, %v209_v34 }
  0xd4   :  { %288 = vmatmul.bf16.vlgmr.msra.gmra.mxu1 %v211_v35 }
 0x151   :  { %v289_v45 = vpop.f32.mrf.mxu1 }
 0x152   :  { %v290_v46 = vadd.f32 %v687_v44, %v289_v45 }
 0x154   :  { %v580_v47 = vmul.f32 -1.442695, %v290_v46 }
 0x156   :  { %694 = vpow2.f32 %v580_v47 }
 0x159   :  { %v291_v48 = vpop.f32.mrf.mxu1 }
 0x15c   :  { %v695_v49 = vpop.eup %694 }
 0x15d   :  { %v296_v50 = vadd.f32 1.0, %v695_v49 }
 0x15f   :  { %696 = vrcp.f32 %v296_v50  ;;  %v308_v54 = vand.u32 2147483648, %v296_v50  ;;  %v306_v56 = vand.u32 2147483647, %v296_v50  ;;  %vm302_vm5 = vweird.f32 %v296_v50 }
 0x161   :  { %v309_v58 = vor.u32 1.1754944e-38, %v308_v54  ;;  %vm307_vm7 = vcmp.eq.f32.partialorder %v306_v56, 8.507059e+37 }
 0x165   :  { %v697_v51 = vpop.eup %696 }
 0x166   :  { %v298_v52 = vmul.f32 %v697_v51, %v296_v50  ;;  %vm303_vm4 = vweird.f32 %v697_v51 }
 0x167   :  { %vm304_vm6 = vmor %vm302_vm5, %vm303_vm4 }
 0x168   :  { %v299_v53 = vsub.f32 1.0, %v298_v52 }
 0x16a   :  { %v300_v55 = vmul.f32 %v697_v51, %v299_v53 }
 0x16c   :  { %v301_v57 = vadd.f32 %v697_v51, %v300_v55 }
 0x16e   :  { %v305_v59 = vsel %vm304_vm6, %v697_v51, %v301_v57 }
 0x16f   :  { %v310_v60 = vsel %vm307_vm7, %v309_v58, %v305_v59 }
 0x170   :  { %v312_v61 = vpack.c.bf16 %v310_v60, %v310_v60 }
 0x172   :  { %389 = vmatmul.bf16.vlgmr.msra.gmra.mxu2 %v312_v61 }
 0x1f5   :  { %v390_v7 = vpop.f32.mrf.mxu2 }
 0x1f6   :  { %v391_v8 = vadd.f32 %v688_v6, %v390_v7 }
 0x1f8   :  { %v613_v9 = vmul.f32 -1.442695, %v391_v8 }
 0x1fa   :  { %698 = vpow2.f32 %v613_v9 }
 0x1fd   :  { %v392_v10 = vpop.f32.mrf.mxu2 }
 0x200   :  { %v699_v11 = vpop.eup %698 }
 0x201   :  { %v397_v12 = vadd.f32 1.0, %v699_v11 }
 0x203   :  { %700 = vrcp.f32 %v397_v12  ;;  %v409_v16 = vand.u32 2147483648, %v397_v12  ;;  %v407_v18 = vand.u32 2147483647, %v397_v12  ;;  %vm403_vm9 = vweird.f32 %v397_v12 }
 0x205   :  { %v410_v20 = vor.u32 1.1754944e-38, %v409_v16  ;;  %vm408_vm11 = vcmp.eq.f32.partialorder %v407_v18, 8.507059e+37 }
 0x209   :  { %v701_v13 = vpop.eup %700 }
 0x20a   :  { %v399_v14 = vmul.f32 %v701_v13, %v397_v12  ;;  %vm404_vm8 = vweird.f32 %v701_v13 }
 0x20b   :  { %vm405_vm10 = vmor %vm403_vm9, %vm404_vm8 }
 0x20c   :  { %v400_v15 = vsub.f32 1.0, %v399_v14 }
 0x20e   :  { %v401_v17 = vmul.f32 %v701_v13, %v400_v15 }
 0x210   :  { %v402_v19 = vadd.f32 %v701_v13, %v401_v17 }
 0x212   :  { %v406_v21 = vsel %vm405_vm10, %v701_v13, %v402_v19 }
 0x213   :  { %v411_v22 = vsel %vm408_vm11, %v410_v20, %v406_v21 }
 0x214   :  { %v413_v23 = vpack.c.bf16 %v411_v22, %v411_v22 }
 0x216   :  { %490 = vmatmul.bf16.vlgmr.msra.gmra.mxu3 %v413_v23 }
 0x299   :  { %v491_v25 = vpop.f32.mrf.mxu3 }
 0x29a   :  { %v492_v26 = vadd.f32 %v689_v24, %v491_v25 }
 0x29c   :  { %495 = vst [vmem:[#allocation11] sm:$0xff] %v492_v26 }
 0x29d   :  { %506 = dma.vmem_to_hbm [thread:$0]  %s502_s16, 128, %s504_s19, [#allocation4]  }
 0x2a1   :  { %v493_v27 = vpop.f32.mrf.mxu3 }
 0x2a2   :  { %852 = dma.done.wait [#allocation4], 128  }
 0x2a3   :  { %853 = vsyncadd [#allocation4], 4294967168 }
 0x2a4   :  { %511 = vsyncpa [#allocation3], 1 }
 0x2a5   :  { %512 = vsyncpa [#allocation6], 1 }
 0x2a6   :  { %513 = vsyncpa [#allocation9], 1 }
 0x2a7   :  { %514 = vsyncpa [#allocation4], 1 }

</bundles_post_ra>
